<compile_context>
chip_gen: v7x
topology: tpu7x:2x2x1
jax: 0.10.0
libtpu: 0.0.40
codegen_flags: <defaults>
</compile_context>

<pallas_src>
import jax
import jax.numpy as jnp
from jax.experimental import pallas as pl
from jax.experimental.pallas import tpu as pltpu


def _round_up(x, m):
    return (x + m - 1) // m * m


def _choose_batch_tile(B, batch_tile):
    # Multiple of 16 (bf16 sublane packing; also satisfies the f32 8-row rule).
    tb = min(batch_tile, _round_up(B, 16))
    # With enough rows, guarantee >= 2 grid steps so the "parallel" batch axis
    # can shard across both TensorCores on v7x (no-op on single-TC v5e/v6e).
    if B >= 32:
        tb = min(tb, _round_up(pl.cdiv(B, 2), 16))
    return max(tb, 16)


def mlp_kernel(x_ref, w1_ref, b1_ref, w2_ref, b2_ref, w3_ref, b3_ref, o_ref):
    # f32 -> bf16 cast done in-kernel (VPU); MXU consumes bf16, accumulates f32.
    x = x_ref[...].astype(jnp.bfloat16)
    h1 = jnp.dot(x, w1_ref[...], preferred_element_type=jnp.float32) + b1_ref[...]
    h1 = jnp.maximum(h1, 0.0).astype(jnp.bfloat16)
    h2 = jnp.dot(h1, w2_ref[...], preferred_element_type=jnp.float32) + b2_ref[...]
    h2 = jnp.maximum(h2, 0.0).astype(jnp.bfloat16)
    out = jnp.dot(h2, w3_ref[...], preferred_element_type=jnp.float32) + b3_ref[...]
    o_ref[...] = out.astype(o_ref.dtype)   # bf16 store at the true output width


def prepare_params(params):
    """One-time pad (hidden -> multiple of 128 lanes) + bf16 cast of weights.

    Done once (outside the per-call path) so no per-forward HBM pass over the
    weights. Input / output feature dims are left UNPADDED (full-array last
    dims are exempt from the 128 rule). Zero padding is exact through
    matmul + bias(0) + ReLU.
    """
    w1, b1, w2, b2, w3, b3 = (params["w1"], params["b1"], params["w2"],
                              params["b2"], params["w3"], params["b3"])
    d_in, hidden = w1.shape
    d_out = w3.shape[1]
    h_p = _round_up(hidden, 128)

    def pad2(a, rows, cols, dtype):
        a = a.astype(dtype)
        return jnp.pad(a, ((0, rows - a.shape[0]), (0, cols - a.shape[1])))

    return dict(
        w1=pad2(w1, d_in, h_p, jnp.bfloat16),
        b1=pad2(b1, 1, h_p, jnp.float32),
        w2=pad2(w2, h_p, h_p, jnp.bfloat16),
        b2=pad2(b2, 1, h_p, jnp.float32),
        w3=pad2(w3, h_p, d_out, jnp.bfloat16),
        b3=b3.astype(jnp.float32).reshape(1, d_out),
        hidden=int(hidden),   # real (unpadded) hidden dim, for cost accounting
    )


def mlp_forward(x, prepared, *, batch_tile=1024):
    """x: (B, d_in) float32. prepared: output of prepare_params()."""
    w1p, b1p = prepared["w1"], prepared["b1"]
    w2p, b2p = prepared["w2"], prepared["b2"]
    w3p, b3p = prepared["w3"], prepared["b3"]
    hidden = int(prepared["hidden"])

    B, d_in = x.shape
    h_p = w1p.shape[1]
    d_out = w3p.shape[1]

    tb = _choose_batch_tile(B, batch_tile)
    n_tiles = pl.cdiv(B, tb)
    b_p = n_tiles * tb
    # Only the batch rows are padded (cheap / usually a no-op); feature dims
    # and dtype of x are untouched on the host.
    xp = x if b_p == B else jnp.pad(x, ((0, b_p - B), (0, 0)))

    # VMEM budget: single-buffered resident weights/biases + double-buffered
    # streamed x/out tiles + live f32 intermediates, with 2x headroom.
    weight_bytes = ((w1p.size + w2p.size + w3p.size) * 2
                    + (b1p.size + b2p.size + b3p.size) * 4)
    stream_bytes = 2 * (tb * d_in * 4 + tb * d_out * 2)
    interm_bytes = 3 * tb * h_p * 4
    vmem_limit = int(min(64 << 20,
                         max(16 << 20,
                             2 * (weight_bytes + stream_bytes + interm_bytes))))

    # Real streamed bytes / useful flops (not padded sizes) for XLA scheduling.
    flops = 2 * B * (d_in * hidden + hidden * hidden + hidden * d_out)
    bytes_accessed = B * d_in * 4 + weight_bytes + B * d_out * 2
    cost = pl.CostEstimate(flops=flops, bytes_accessed=bytes_accessed,
                           transcendentals=0)

    def call(single_buffer_weights):
        if single_buffer_weights:
            # Constant index_map -> DMA'd once; one VMEM buffer is enough.
            def resident(a):
                return pl.BlockSpec(a.shape, lambda i: (0, 0),
                                    pipeline_mode=pl.Buffered(1))
        else:
            def resident(a):
                return pl.BlockSpec(a.shape, lambda i: (0, 0))
        return pl.pallas_call(
            mlp_kernel,
            out_shape=jax.ShapeDtypeStruct((b_p, d_out), jnp.bfloat16),
            grid=(n_tiles,),
            in_specs=[
                pl.BlockSpec((tb, d_in), lambda i: (i, 0)),   # x: streamed batch
                resident(w1p), resident(b1p),
                resident(w2p), resident(b2p),
                resident(w3p), resident(b3p),
            ],
            out_specs=pl.BlockSpec((tb, d_out), lambda i: (i, 0)),
            compiler_params=pltpu.CompilerParams(
                dimension_semantics=("parallel",),
                vmem_limit_bytes=vmem_limit),
            cost_estimate=cost,
        )(xp, w1p, b1p, w2p, b2p, w3p, b3p)

    try:
        out_padded = call(True)
    except Exception:
        # Fallback if pipeline_mode=pl.Buffered(1) is unsupported on this build.
        out_padded = call(False)

    # Drop batch padding; return f32 like the PyTorch module.
    return out_padded[:B].astype(jnp.float32)


def init_params(key, input_dim, hidden_dim, output_dim):
    """Deterministic init mimicking nn.Linear (uniform +/- 1/sqrt(fan_in))."""
    keys = jax.random.split(key, 6)

    def linear(kw, kb, fan_in, fan_out):
        bound = 1.0 / jnp.sqrt(fan_in)
        # stored as (in, out) so the kernel does x @ W
        w = jax.random.uniform(kw, (fan_in, fan_out), jnp.float32, -bound, bound)
        b = jax.random.uniform(kb, (1, fan_out), jnp.float32, -bound, bound)
        return w, b

    w1, b1 = linear(keys[0], keys[1], input_dim, hidden_dim)
    w2, b2 = linear(keys[2], keys[3], hidden_dim, hidden_dim)
    w3, b3 = linear(keys[4], keys[5], hidden_dim, output_dim)
    return dict(w1=w1, b1=b1, w2=w2, b2=b2, w3=w3, b3=b3)


def mlp_reference_f32(x, p):
    h1 = jnp.maximum(x @ p["w1"] + p["b1"], 0.0)
    h2 = jnp.maximum(h1 @ p["w2"] + p["b2"], 0.0)
    return h2 @ p["w3"] + p["b3"]


def mlp_reference_bf16(x, p):
    f = lambda a: a.astype(jnp.bfloat16)
    h1 = jnp.maximum(
        jnp.dot(f(x), f(p["w1"]), preferred_element_type=jnp.float32) + p["b1"], 0.0)
    h2 = jnp.maximum(
        jnp.dot(f(h1), f(p["w2"]), preferred_element_type=jnp.float32) + p["b2"], 0.0)
    return jnp.dot(f(h2), f(p["w3"]), preferred_element_type=jnp.float32) + p["b3"]


if __name__ == "__main__":
    input_dim, hidden_dim, output_dim = 16, 32, 8
    batch = 8

    key = jax.random.PRNGKey(0)
    kx, kp = jax.random.split(key)
    x = jax.random.normal(kx, (batch, input_dim), jnp.float32)
    params = init_params(kp, input_dim, hidden_dim, output_dim)

    # One-time weight pad/cast (kept out of the per-forward path).
    prepared = prepare_params(params)

    out = mlp_forward(x, prepared)
    out = jax.block_until_ready(out)

    assert out.shape == (batch, output_dim)
    assert out.dtype == jnp.float32

    # Tight check against a bf16-matmul / f32-accumulate reference (tolerance
    # covers the kernel's bf16 output rounding).
    ref_bf16 = mlp_reference_bf16(x, params)
    assert jnp.allclose(out, ref_bf16, atol=1e-2, rtol=1e-2)

    # Loose check against the full-f32 PyTorch-equivalent reference.
    ref_f32 = mlp_reference_f32(x, params)
    assert jnp.allclose(out, ref_f32, atol=5e-2, rtol=5e-2)

    print("KERNEL_OK")
</pallas_src>

<mosaic_0001>
module attributes {stable_mosaic.version = 11 : i64} {
  func.func @mlp_kernel(%arg0: i32, %arg1: memref<16x16xf32, #tpu.memory_space<vmem>>, %arg2: memref<16x128xbf16, #tpu.memory_space<vmem>>, %arg3: memref<1x128xf32, #tpu.memory_space<vmem>>, %arg4: memref<128x128xbf16, #tpu.memory_space<vmem>>, %arg5: memref<1x128xf32, #tpu.memory_space<vmem>>, %arg6: memref<128x8xbf16, #tpu.memory_space<vmem>>, %arg7: memref<1x8xf32, #tpu.memory_space<vmem>>, %arg8: memref<16x8xbf16, #tpu.memory_space<vmem>>) attributes {dimension_semantics = [#tpu.dimension_semantics<parallel>], iteration_bounds = array<i64: 1>, scalar_prefetch = 0 : i64, scratch_operands = 0 : i64, tpu.core_type = #tpu.core_type<tc>, window_params = [{transform_indices = @transform_0, window_bounds = array<i64: 16, 16>}, {pipeline_mode = #tpu.pipeline_mode<synchronous>, transform_indices = @transform_1, window_bounds = array<i64: 16, 128>}, {pipeline_mode = #tpu.pipeline_mode<synchronous>, transform_indices = @transform_2, window_bounds = array<i64: 1, 128>}, {pipeline_mode = #tpu.pipeline_mode<synchronous>, transform_indices = @transform_3, window_bounds = array<i64: 128, 128>}, {pipeline_mode = #tpu.pipeline_mode<synchronous>, transform_indices = @transform_4, window_bounds = array<i64: 1, 128>}, {pipeline_mode = #tpu.pipeline_mode<synchronous>, transform_indices = @transform_5, window_bounds = array<i64: 128, 8>}, {pipeline_mode = #tpu.pipeline_mode<synchronous>, transform_indices = @transform_6, window_bounds = array<i64: 1, 8>}, {transform_indices = @transform_7, window_bounds = array<i64: 16, 8>}]} {
    %c0 = arith.constant 0 : index
    %c0_0 = arith.constant 0 : index
    %0 = vector.load %arg1[%c0, %c0_0] : memref<16x16xf32, #tpu.memory_space<vmem>>, vector<16x16xf32>
    %1 = arith.truncf %0 : vector<16x16xf32> to vector<16x16xbf16>
    %c0_1 = arith.constant 0 : index
    %c0_2 = arith.constant 0 : index
    %2 = vector.load %arg2[%c0_1, %c0_2] : memref<16x128xbf16, #tpu.memory_space<vmem>>, vector<16x128xbf16>
    %cst = arith.constant dense<0.000000e+00> : vector<16x128xf32>
    %3 = tpu.matmul %1, %2, %cst {dimension_numbers = #tpu.dot_dimension_numbers<[1], [0], [0], [1], [0, 0, 1, 1], [], []>} : vector<16x16xbf16>, vector<16x128xbf16>, vector<16x128xf32> -> vector<16x128xf32>
    %c0_3 = arith.constant 0 : index
    %c0_4 = arith.constant 0 : index
    %4 = vector.load %arg3[%c0_3, %c0_4] : memref<1x128xf32, #tpu.memory_space<vmem>>, vector<1x128xf32>
    %5 = vector.broadcast %4 : vector<1x128xf32> to vector<16x128xf32>
    %6 = arith.addf %3, %5 : vector<16x128xf32>
    %cst_5 = arith.constant 0.000000e+00 : f32
    %7 = vector.broadcast %cst_5 : f32 to vector<16x128xf32>
    %8 = arith.maximumf %6, %7 : vector<16x128xf32>
    %9 = arith.truncf %8 : vector<16x128xf32> to vector<16x128xbf16>
    %c0_6 = arith.constant 0 : index
    %c0_7 = arith.constant 0 : index
    %10 = vector.load %arg4[%c0_6, %c0_7] : memref<128x128xbf16, #tpu.memory_space<vmem>>, vector<128x128xbf16>
    %cst_8 = arith.constant dense<0.000000e+00> : vector<16x128xf32>
    %11 = tpu.matmul %9, %10, %cst_8 {dimension_numbers = #tpu.dot_dimension_numbers<[1], [0], [0], [1], [0, 0, 1, 1], [], []>} : vector<16x128xbf16>, vector<128x128xbf16>, vector<16x128xf32> -> vector<16x128xf32>
    %c0_9 = arith.constant 0 : index
    %c0_10 = arith.constant 0 : index
    %12 = vector.load %arg5[%c0_9, %c0_10] : memref<1x128xf32, #tpu.memory_space<vmem>>, vector<1x128xf32>
    %13 = vector.broadcast %12 : vector<1x128xf32> to vector<16x128xf32>
    %14 = arith.addf %11, %13 : vector<16x128xf32>
    %cst_11 = arith.constant 0.000000e+00 : f32
    %15 = vector.broadcast %cst_11 : f32 to vector<16x128xf32>
    %16 = arith.maximumf %14, %15 : vector<16x128xf32>
    %17 = arith.truncf %16 : vector<16x128xf32> to vector<16x128xbf16>
    %c0_12 = arith.constant 0 : index
    %c0_13 = arith.constant 0 : index
    %18 = vector.load %arg6[%c0_12, %c0_13] : memref<128x8xbf16, #tpu.memory_space<vmem>>, vector<128x8xbf16>
    %cst_14 = arith.constant dense<0.000000e+00> : vector<16x8xf32>
    %19 = tpu.matmul %17, %18, %cst_14 {dimension_numbers = #tpu.dot_dimension_numbers<[1], [0], [0], [1], [0, 0, 1, 1], [], []>} : vector<16x128xbf16>, vector<128x8xbf16>, vector<16x8xf32> -> vector<16x8xf32>
    %c0_15 = arith.constant 0 : index
    %c0_16 = arith.constant 0 : index
    %20 = vector.load %arg7[%c0_15, %c0_16] : memref<1x8xf32, #tpu.memory_space<vmem>>, vector<1x8xf32>
    %21 = vector.broadcast %20 : vector<1x8xf32> to vector<16x8xf32>
    %22 = arith.addf %19, %21 : vector<16x8xf32>
    %23 = arith.truncf %22 : vector<16x8xf32> to vector<16x8xbf16>
    %c0_17 = arith.constant 0 : index
    %c0_18 = arith.constant 0 : index
    %24 = vector.load %arg8[%c0_17, %c0_18] : memref<16x8xbf16, #tpu.memory_space<vmem>>, vector<16x8xbf16>
    tpu.vector_store %arg8[%c0_17, %c0_18], %23 {strides = array<i32>} : memref<16x8xbf16, #tpu.memory_space<vmem>>, vector<16x8xbf16>,
    return
  }
  func.func @transform_0(%arg0: i32) -> (i32, i32) {
    %c0_i32 = arith.constant 0 : i32
    %c0_i32_0 = arith.constant 0 : i32
    return %arg0, %c0_i32 : i32, i32
  }
  func.func @transform_1(%arg0: i32) -> (i32, i32) {
    %c0_i32 = arith.constant 0 : i32
    %c0_i32_0 = arith.constant 0 : i32
    %c0_i32_1 = arith.constant 0 : i32
    return %c0_i32, %c0_i32_0 : i32, i32
  }
  func.func @transform_2(%arg0: i32) -> (i32, i32) {
    %c0_i32 = arith.constant 0 : i32
    %c0_i32_0 = arith.constant 0 : i32
    %c0_i32_1 = arith.constant 0 : i32
    return %c0_i32, %c0_i32_0 : i32, i32
  }
  func.func @transform_3(%arg0: i32) -> (i32, i32) {
    %c0_i32 = arith.constant 0 : i32
    %c0_i32_0 = arith.constant 0 : i32
    %c0_i32_1 = arith.constant 0 : i32
    return %c0_i32, %c0_i32_0 : i32, i32
  }
  func.func @transform_4(%arg0: i32) -> (i32, i32) {
    %c0_i32 = arith.constant 0 : i32
    %c0_i32_0 = arith.constant 0 : i32
    %c0_i32_1 = arith.constant 0 : i32
    return %c0_i32, %c0_i32_0 : i32, i32
  }
  func.func @transform_5(%arg0: i32) -> (i32, i32) {
    %c0_i32 = arith.constant 0 : i32
    %c0_i32_0 = arith.constant 0 : i32
    %c0_i32_1 = arith.constant 0 : i32
    return %c0_i32, %c0_i32_0 : i32, i32
  }
  func.func @transform_6(%arg0: i32) -> (i32, i32) {
    %c0_i32 = arith.constant 0 : i32
    %c0_i32_0 = arith.constant 0 : i32
    %c0_i32_1 = arith.constant 0 : i32
    return %c0_i32, %c0_i32_0 : i32, i32
  }
  func.func @transform_7(%arg0: i32) -> (i32, i32) {
    %c0_i32 = arith.constant 0 : i32
    %c0_i32_0 = arith.constant 0 : i32
    return %arg0, %c0_i32 : i32, i32
  }
}

module attributes {stable_mosaic.version = 11 : i64} {
  func.func @mlp_kernel(%arg0: i32, %arg1: memref<16x16xf32, #tpu.memory_space<vmem>>, %arg2: memref<16x128xbf16, #tpu.memory_space<vmem>>, %arg3: memref<1x128xf32, #tpu.memory_space<vmem>>, %arg4: memref<128x128xbf16, #tpu.memory_space<vmem>>, %arg5: memref<1x128xf32, #tpu.memory_space<vmem>>, %arg6: memref<128x8xbf16, #tpu.memory_space<vmem>>, %arg7: memref<1x8xf32, #tpu.memory_space<vmem>>, %arg8: memref<16x8xbf16, #tpu.memory_space<vmem>>) attributes {dimension_semantics = [#tpu.dimension_semantics<parallel>], iteration_bounds = array<i64: 1>, scalar_prefetch = 0 : i64, scratch_operands = 0 : i64, tpu.core_type = #tpu.core_type<tc>, window_params = [{transform_indices = @transform_0, window_bounds = array<i64: 16, 16>}, {pipeline_mode = #tpu.pipeline_mode<synchronous>, transform_indices = @transform_1, window_bounds = array<i64: 16, 128>}, {pipeline_mode = #tpu.pipeline_mode<synchronous>, transform_indices = @transform_2, window_bounds = array<i64: 1, 128>}, {pipeline_mode = #tpu.pipeline_mode<synchronous>, transform_indices = @transform_3, window_bounds = array<i64: 128, 128>}, {pipeline_mode = #tpu.pipeline_mode<synchronous>, transform_indices = @transform_4, window_bounds = array<i64: 1, 128>}, {pipeline_mode = #tpu.pipeline_mode<synchronous>, transform_indices = @transform_5, window_bounds = array<i64: 128, 8>}, {pipeline_mode = #tpu.pipeline_mode<synchronous>, transform_indices = @transform_6, window_bounds = array<i64: 1, 8>}, {transform_indices = @transform_7, window_bounds = array<i64: 16, 8>}]} {
    %c0 = arith.constant 0 : index
    %c0_0 = arith.constant 0 : index
    %0 = vector.load %arg1[%c0, %c0_0] : memref<16x16xf32, #tpu.memory_space<vmem>>, vector<16x16xf32>
    %1 = arith.truncf %0 : vector<16x16xf32> to vector<16x16xbf16>
    %c0_1 = arith.constant 0 : index
    %c0_2 = arith.constant 0 : index
    %2 = vector.load %arg2[%c0_1, %c0_2] : memref<16x128xbf16, #tpu.memory_space<vmem>>, vector<16x128xbf16>
    %cst = arith.constant dense<0.000000e+00> : vector<16x128xf32>
    %3 = tpu.matmul %1, %2, %cst {dimension_numbers = #tpu.dot_dimension_numbers<[1], [0], [0], [1], [0, 0, 1, 1], [], []>} : vector<16x16xbf16>, vector<16x128xbf16>, vector<16x128xf32> -> vector<16x128xf32>
    %c0_3 = arith.constant 0 : index
    %c0_4 = arith.constant 0 : index
    %4 = vector.load %arg3[%c0_3, %c0_4] : memref<1x128xf32, #tpu.memory_space<vmem>>, vector<1x128xf32>
    %5 = vector.broadcast %4 : vector<1x128xf32> to vector<16x128xf32>
    %6 = arith.addf %3, %5 : vector<16x128xf32>
    %cst_5 = arith.constant 0.000000e+00 : f32
    %7 = vector.broadcast %cst_5 : f32 to vector<16x128xf32>
    %8 = arith.maximumf %6, %7 : vector<16x128xf32>
    %9 = arith.truncf %8 : vector<16x128xf32> to vector<16x128xbf16>
    %c0_6 = arith.constant 0 : index
    %c0_7 = arith.constant 0 : index
    %10 = vector.load %arg4[%c0_6, %c0_7] : memref<128x128xbf16, #tpu.memory_space<vmem>>, vector<128x128xbf16>
    %cst_8 = arith.constant dense<0.000000e+00> : vector<16x128xf32>
    %11 = tpu.matmul %9, %10, %cst_8 {dimension_numbers = #tpu.dot_dimension_numbers<[1], [0], [0], [1], [0, 0, 1, 1], [], []>} : vector<16x128xbf16>, vector<128x128xbf16>, vector<16x128xf32> -> vector<16x128xf32>
    %c0_9 = arith.constant 0 : index
    %c0_10 = arith.constant 0 : index
    %12 = vector.load %arg5[%c0_9, %c0_10] : memref<1x128xf32, #tpu.memory_space<vmem>>, vector<1x128xf32>
    %13 = vector.broadcast %12 : vector<1x128xf32> to vector<16x128xf32>
    %14 = arith.addf %11, %13 : vector<16x128xf32>
    %cst_11 = arith.constant 0.000000e+00 : f32
    %15 = vector.broadcast %cst_11 : f32 to vector<16x128xf32>
    %16 = arith.maximumf %14, %15 : vector<16x128xf32>
    %17 = arith.truncf %16 : vector<16x128xf32> to vector<16x128xbf16>
    %c0_12 = arith.constant 0 : index
    %c0_13 = arith.constant 0 : index
    %18 = vector.load %arg6[%c0_12, %c0_13] : memref<128x8xbf16, #tpu.memory_space<vmem>>, vector<128x8xbf16>
    %cst_14 = arith.constant dense<0.000000e+00> : vector<16x8xf32>
    %19 = tpu.matmul %17, %18, %cst_14 {dimension_numbers = #tpu.dot_dimension_numbers<[1], [0], [0], [1], [0, 0, 1, 1], [], []>} : vector<16x128xbf16>, vector<128x8xbf16>, vector<16x8xf32> -> vector<16x8xf32>
    %c0_15 = arith.constant 0 : index
    %c0_16 = arith.constant 0 : index
    %20 = vector.load %arg7[%c0_15, %c0_16] : memref<1x8xf32, #tpu.memory_space<vmem>>, vector<1x8xf32>
    %21 = vector.broadcast %20 : vector<1x8xf32> to vector<16x8xf32>
    %22 = arith.addf %19, %21 : vector<16x8xf32>
    %23 = arith.truncf %22 : vector<16x8xf32> to vector<16x8xbf16>
    %c0_17 = arith.constant 0 : index
    %c0_18 = arith.constant 0 : index
    %24 = vector.load %arg8[%c0_17, %c0_18] : memref<16x8xbf16, #tpu.memory_space<vmem>>, vector<16x8xbf16>
    tpu.vector_store %arg8[%c0_17, %c0_18], %23 {strides = array<i32>} : memref<16x8xbf16, #tpu.memory_space<vmem>>, vector<16x8xbf16>,
    return
  }
  func.func @transform_0(%arg0: i32) -> (i32, i32) {
    %c0_i32 = arith.constant 0 : i32
    %c0_i32_0 = arith.constant 0 : i32
    return %arg0, %c0_i32 : i32, i32
  }
  func.func @transform_1(%arg0: i32) -> (i32, i32) {
    %c0_i32 = arith.constant 0 : i32
    %c0_i32_0 = arith.constant 0 : i32
    %c0_i32_1 = arith.constant 0 : i32
    return %c0_i32, %c0_i32_0 : i32, i32
  }
  func.func @transform_2(%arg0: i32) -> (i32, i32) {
    %c0_i32 = arith.constant 0 : i32
    %c0_i32_0 = arith.constant 0 : i32
    %c0_i32_1 = arith.constant 0 : i32
    return %c0_i32, %c0_i32_0 : i32, i32
  }
  func.func @transform_3(%arg0: i32) -> (i32, i32) {
    %c0_i32 = arith.constant 0 : i32
    %c0_i32_0 = arith.constant 0 : i32
    %c0_i32_1 = arith.constant 0 : i32
    return %c0_i32, %c0_i32_0 : i32, i32
  }
  func.func @transform_4(%arg0: i32) -> (i32, i32) {
    %c0_i32 = arith.constant 0 : i32
    %c0_i32_0 = arith.constant 0 : i32
    %c0_i32_1 = arith.constant 0 : i32
    return %c0_i32, %c0_i32_0 : i32, i32
  }
  func.func @transform_5(%arg0: i32) -> (i32, i32) {
    %c0_i32 = arith.constant 0 : i32
    %c0_i32_0 = arith.constant 0 : i32
    %c0_i32_1 = arith.constant 0 : i32
    return %c0_i32, %c0_i32_0 : i32, i32
  }
  func.func @transform_6(%arg0: i32) -> (i32, i32) {
    %c0_i32 = arith.constant 0 : i32
    %c0_i32_0 = arith.constant 0 : i32
    %c0_i32_1 = arith.constant 0 : i32
    return %c0_i32, %c0_i32_0 : i32, i32
  }
  func.func @transform_7(%arg0: i32) -> (i32, i32) {
    %c0_i32 = arith.constant 0 : i32
    %c0_i32_0 = arith.constant 0 : i32
    return %arg0, %c0_i32 : i32, i32
  }
}

</mosaic_0001>

<bundles_post_ra>
// kernel: tpu_custom_call.1
= control target key start
LH: loop header
LB: loop body
LE: loop exit
PB: predicated region body
PF: predicated region fallthrough
CT: control target
= control target key end

     0   :  { %12 = vsyncpa [#allocation3], 0  ;;  %s487_s24 = smov [#allocation2]   ;;  %s633_s0 = inlined_call_operand.hbm [shape: f32[16,16], index: 0, kind: input, shape index: {}]   ;;  %s634_s1 = inlined_call_operand.vmem [shape: bf16[16,128], index: 1, kind: input, shape index: {}]   ;;  %s635_s2 = inlined_call_operand.vmem [shape: f32[1,128], index: 2, kind: input, shape index: {}]   ;;  %s636_s3 = inlined_call_operand.vmem [shape: bf16[128,128], index: 3, kind: input, shape index: {}]   ;;  %s637_s4 = inlined_call_operand.vmem [shape: f32[1,128], index: 4, kind: input, shape index: {}]   ;;  %s638_s5 = inlined_call_operand.vmem [shape: bf16[128,8], index: 5, kind: input, shape index: {}]   ;;  %s639_s6 = inlined_call_operand.vmem [shape: f32[1,8], index: 6, kind: input, shape index: {}]   ;;  %s640_s7 = inlined_call_operand.vmem [shape: bf16[16,8], index: 7, kind: output, shape index: {}]  }
   0x1   :  { %s18_s25 = sshll.u32 %s487_s24, 4  ;;  %s463_s28 = scalar_lea.hbm %s633_s0, 256  ;;  %s19_s25 = int_to_ptr.vmem [resolvable:$true] %s18_s25 }
   0x2   :  { %p464_p0 = scmp.ne.s32.totalorder %s633_s0, %s463_s28  ;;  %p467_p1 = scmp.lt.u32.totalorder %s463_s28, %s633_s0 }
   0x4   :  { %p469_p2 = pnand %p467_p1, %p464_p0 }
   0x6   :  { %472 = shalt.err (!%p469_p2)
}
   0x7   :  { %s473_s10 = scalar_lea.vmem %s19_s25, 256  ;;  %p478_p4 = scmp.lt.s32.totalorder %s19_s25, %s19_s25 }
   0x8   :  { %p474_p3 = scmp.ne.s32.totalorder %s19_s25, %s473_s10  ;;  %p479_p5 = scmp.lt.s32.totalorder %s473_s10, %s473_s10 }
   0xa   :  { %p480_p6 = por %p479_p5, %p478_p4 }
   0xc   :  { %p481_p7 = pnand %p480_p6, %p474_p3 }
   0xe   :  { %484 = shalt.err (!%p481_p7)
}
   0xf   :  { %s488_s11 = smov 128   ;;  %s489_s12 = smov 8  }
  0x10   :  { %24 = dma.hbm_to_vmem [thread:$0]  %s633_s0, 256, %s19_s25, [#allocation3], %s488_s11, %s488_s11, %s489_s12  }
  0x11   :  { %485 = dma.done.wait [#allocation3], 256  }
  0x12   :  { %486 = vsyncadd [#allocation3], 4294967040  ;;  %v490_v0 = vmov 0.0   ;;  %vm491_vm0 = vmmov 0   ;;  %v446_v1 = vld [vmem:[%s634_s1] sm:$0xff]   ;;  %v42_v3 = vld [vmem:[#allocation2 + $0x8] sm:$0xff] }
  0x13   :  { %395 = vmatprep.subr.bf16.mxu0 %v490_v0  ;;  %397 = vmatprep.mubr.msk.bf16.mxu0 %vm491_vm0, %v490_v0  ;;  %v41_v2 = vld [vmem:[#allocation2] sm:$0xff]  ;;  %vm59_vm1 = vcmask 130048   ;;  %v448_v6 = vld [vmem:[%s636_s3 + $0x8] sm:$0xff]   ;;  %v449_v7 = vld [vmem:[%s636_s3 + $0x10] sm:$0xff]   ;;  %vm342_vm2 = vcmask 60416  }
  0x14   :  { %401 = vmatprep.subr.bf16.mxu1 %v490_v0  ;;  %417 = vmatprep.mubr.msk.bf16.mxu1 %vm491_vm0, %v490_v0  ;;  %v43_v4 = vpack.c.bf16 %v42_v3, %v41_v2  ;;  %v447_v5 = vld [vmem:[%s636_s3] sm:$0xff]   ;;  %v450_v8 = vld [vmem:[%s636_s3 + $0x18] sm:$0xff]   ;;  %v452_v10 = vld [vmem:[%s636_s3 + $0x28] sm:$0xff]  }
  0x15   :  { %396 = vmatpush3.bf16.msra.mxu0 %v446_v1  ;;  %402 = vmatpush3.bf16.msra.mxu1 %v447_v5  ;;  %v451_v9 = vld [vmem:[%s636_s3 + $0x20] sm:$0xff]   ;;  %v453_v11 = vld [vmem:[%s636_s3 + $0x30] sm:$0xff]   ;;  %v454_v12 = vld [vmem:[%s636_s3 + $0x38] sm:$0xff]  }
  0x16   :  { %421 = vmatprep.subr.bf16.mxu0 %v490_v0  ;;  %403 = vmatprep.subr.bf16.mxu1 %v490_v0  ;;  %v455_v13 = vld [vmem:[%s638_s5] sm:$0xff]   ;;  %v456_v14 = vld [vmem:[%s638_s5 + $0x8] sm:$0xff]   ;;  %v457_v15 = vld [vmem:[%s638_s5 + $0x10] sm:$0xff]  }
  0x17   :  { %v458_v16 = vld [vmem:[%s638_s5 + $0x18] sm:$0xff]   ;;  %v459_v17 = vld [vmem:[%s638_s5 + $0x20] sm:$0xff]   ;;  %v460_v18 = vld [vmem:[%s638_s5 + $0x28] sm:$0xff]  }
  0x18   :  { %398 = vmatmul.mubr.msk.bf16.vlgmr.msra.gmra.mrb[0].mxu0 %vm59_vm1, %v43_v4  ;;  %v350_v19 = vld [vmem:[%s635_s2] ss:$0 sm:$0xff]  ;;  %v461_v29 = vld [vmem:[%s638_s5 + $0x30] sm:$0xff]   ;;  %v462_v30 = vld [vmem:[%s638_s5 + $0x38] sm:$0xff]  }
  0x19   :  { %437 = vmatprep.mubr.msk.bf16.mxu0 %vm491_vm0, %v490_v0  ;;  %404 = vmatpush3.bf16.msra.mxu1 %v448_v6  ;;  %v353_v31 = vld [vmem:[%s637_s4] ss:$0 sm:$0xff] }
  0x1a   :  { %405 = vmatprep.subr.bf16.mxu1 %v490_v0  ;;  %422 = vmatpush3.bf16.msra.mxu0 %v455_v13  ;;  %v362_v41 = vld [vmem:[%s639_s6] ss:$0 sm:$0xff] }
  0x1b   :  { %423 = vmatprep.subr.bf16.mxu0 %v490_v0 }
  0x1d   :  { %406 = vmatpush3.bf16.msra.mxu1 %v449_v7 }
  0x1e   :  { %407 = vmatprep.subr.bf16.mxu1 %v490_v0  ;;  %424 = vmatpush3.bf16.msra.mxu0 %v456_v14 }
  0x1f   :  { %425 = vmatprep.subr.bf16.mxu0 %v490_v0 }
  0x21   :  { %408 = vmatpush3.bf16.msra.mxu1 %v450_v8 }
  0x22   :  { %409 = vmatprep.subr.bf16.mxu1 %v490_v0  ;;  %426 = vmatpush3.bf16.msra.mxu0 %v457_v15 }
  0x23   :  { %427 = vmatprep.subr.bf16.mxu0 %v490_v0 }
  0x25   :  { %410 = vmatpush3.bf16.msra.mxu1 %v451_v9 }
  0x26   :  { %411 = vmatprep.subr.bf16.mxu1 %v490_v0  ;;  %428 = vmatpush3.bf16.msra.mxu0 %v458_v16 }
  0x27   :  { %429 = vmatprep.subr.bf16.mxu0 %v490_v0 }
  0x29   :  { %412 = vmatpush3.bf16.msra.mxu1 %v452_v10 }
  0x2a   :  { %413 = vmatprep.subr.bf16.mxu1 %v490_v0  ;;  %430 = vmatpush3.bf16.msra.mxu0 %v459_v17 }
  0x2b   :  { %431 = vmatprep.subr.bf16.mxu0 %v490_v0 }
  0x2d   :  { %414 = vmatpush3.bf16.msra.mxu1 %v453_v11 }
  0x2e   :  { %415 = vmatprep.subr.bf16.mxu1 %v490_v0  ;;  %432 = vmatpush3.bf16.msra.mxu0 %v460_v18 }
  0x2f   :  { %433 = vmatprep.subr.bf16.mxu0 %v490_v0 }
  0x31   :  { %416 = vmatpush3.bf16.msra.mxu1 %v454_v12 }
  0x32   :  { %434 = vmatpush3.bf16.msra.mxu0 %v461_v29 }
  0x33   :  { %435 = vmatprep.subr.bf16.mxu0 %v490_v0 }
  0x36   :  { %436 = vmatpush3.bf16.msra.mxu0 %v462_v30 }
  0xeb   :  { %v97_v20 = vpop.f32.mrb[0].mxu0 }
  0xec   :  { %v98_v21 = vadd.f32 %v350_v19, %v97_v20  ;;  %v399_v22 = vpop.f32.mrb[1].mxu0 }
  0xed   :  { %v100_v23 = vpop.f32.mrb[2].mxu0 }
  0xee   :  { %v101_v24 = vadd.f32 %v350_v19, %v100_v23  ;;  %v400_v25 = vpop.f32.mrb[3].mxu0  ;;  %v104_v26 = vmax.f32 %v98_v21, 0.0 }
  0xf0   :  { %v105_v27 = vmax.f32 %v101_v24, 0.0 }
  0xf2   :  { %v106_v28 = vpack.c.bf16 %v105_v27, %v104_v26 }
  0xf4   :  { %418 = vmatmul.mubr.bf16.vlgmr.msra.gmra.mrb[0].mxu1 %v106_v28 }
 0x1c7   :  { %v212_v32 = vpop.f32.mrb[0].mxu1 }
 0x1c8   :  { %v213_v33 = vadd.f32 %v353_v31, %v212_v32  ;;  %v419_v34 = vpop.f32.mrb[1].mxu1 }
 0x1c9   :  { %v215_v35 = vpop.f32.mrb[2].mxu1 }
 0x1ca   :  { %v216_v36 = vadd.f32 %v353_v31, %v215_v35  ;;  %v420_v37 = vpop.f32.mrb[3].mxu1  ;;  %v219_v38 = vmax.f32 %v213_v33, 0.0 }
 0x1cc   :  { %v220_v39 = vmax.f32 %v216_v36, 0.0 }
 0x1ce   :  { %v221_v40 = vpack.c.bf16 %v220_v39, %v219_v38 }
 0x1d0   :  { %438 = vmatmul.mubr.bf16.vlgmr.msra.gmra.mrb[4].mxu0 %v221_v40 }
 0x2a3   :  { %v327_v42 = vpop.f32.mrb[4].mxu0 }
 0x2a4   :  { %v328_v43 = vadd.f32 %v362_v41, %v327_v42  ;;  %v439_v44 = vpop.f32.mrb[5].mxu0 }
 0x2a5   :  { %v330_v45 = vpop.f32.mrb[6].mxu0 }
 0x2a6   :  { %v373_v46 = vpack.c.bf16 %v328_v43, %v328_v43  ;;  %v331_v47 = vadd.f32 %v362_v41, %v330_v45  ;;  %v440_v48 = vpop.f32.mrb[7].mxu0 }
 0x2a8   :  { %343 = vst.msk [vmem:[%s640_s7] sm:$0xf] %vm342_vm2, %v373_v46  ;;  %v374_v49 = vpack.c.bf16 %v331_v47, %v331_v47 }
 0x2aa   :  { %344 = vst.msk [vmem:[%s640_s7 + $0x4] sm:$0xf] %vm342_vm2, %v374_v49 }
 0x2ab   :  { %349 = vsyncpa [#allocation3], 1 }

// kernel: tpu_custom_call.1
= control target key start
LH: loop header
LB: loop body
LE: loop exit
PB: predicated region body
PF: predicated region fallthrough
CT: control target
= control target key end

     0   :  { %12 = vsyncpa [#allocation3], 0  ;;  %s487_s24 = smov [#allocation2]   ;;  %s633_s0 = inlined_call_operand.hbm [shape: f32[16,16], index: 0, kind: input, shape index: {}]   ;;  %s634_s1 = inlined_call_operand.vmem [shape: bf16[16,128], index: 1, kind: input, shape index: {}]   ;;  %s635_s2 = inlined_call_operand.vmem [shape: f32[1,128], index: 2, kind: input, shape index: {}]   ;;  %s636_s3 = inlined_call_operand.vmem [shape: bf16[128,128], index: 3, kind: input, shape index: {}]   ;;  %s637_s4 = inlined_call_operand.vmem [shape: f32[1,128], index: 4, kind: input, shape index: {}]   ;;  %s638_s5 = inlined_call_operand.vmem [shape: bf16[128,8], index: 5, kind: input, shape index: {}]   ;;  %s639_s6 = inlined_call_operand.vmem [shape: f32[1,8], index: 6, kind: input, shape index: {}]   ;;  %s640_s7 = inlined_call_operand.vmem [shape: bf16[16,8], index: 7, kind: output, shape index: {}]  }
   0x1   :  { %s18_s25 = sshll.u32 %s487_s24, 4  ;;  %s463_s28 = scalar_lea.hbm %s633_s0, 256  ;;  %s19_s25 = int_to_ptr.vmem [resolvable:$true] %s18_s25 }
   0x2   :  { %p464_p0 = scmp.ne.s32.totalorder %s633_s0, %s463_s28  ;;  %p467_p1 = scmp.lt.u32.totalorder %s463_s28, %s633_s0 }
   0x4   :  { %p469_p2 = pnand %p467_p1, %p464_p0 }
   0x6   :  { %472 = shalt.err (!%p469_p2)
}
   0x7   :  { %s473_s10 = scalar_lea.vmem %s19_s25, 256  ;;  %p478_p4 = scmp.lt.s32.totalorder %s19_s25, %s19_s25 }
   0x8   :  { %p474_p3 = scmp.ne.s32.totalorder %s19_s25, %s473_s10  ;;  %p479_p5 = scmp.lt.s32.totalorder %s473_s10, %s473_s10 }
   0xa   :  { %p480_p6 = por %p479_p5, %p478_p4 }
   0xc   :  { %p481_p7 = pnand %p480_p6, %p474_p3 }
   0xe   :  { %484 = shalt.err (!%p481_p7)
}
   0xf   :  { %s488_s11 = smov 128   ;;  %s489_s12 = smov 8  }
  0x10   :  { %24 = dma.hbm_to_vmem [thread:$0]  %s633_s0, 256, %s19_s25, [#allocation3], %s488_s11, %s488_s11, %s489_s12  }
  0x11   :  { %485 = dma.done.wait [#allocation3], 256  }
  0x12   :  { %486 = vsyncadd [#allocation3], 4294967040  ;;  %v490_v0 = vmov 0.0   ;;  %vm491_vm0 = vmmov 0   ;;  %v446_v1 = vld [vmem:[%s634_s1] sm:$0xff]   ;;  %v42_v3 = vld [vmem:[#allocation2 + $0x8] sm:$0xff] }
  0x13   :  { %395 = vmatprep.subr.bf16.mxu0 %v490_v0  ;;  %397 = vmatprep.mubr.msk.bf16.mxu0 %vm491_vm0, %v490_v0  ;;  %v41_v2 = vld [vmem:[#allocation2] sm:$0xff]  ;;  %vm59_vm1 = vcmask 130048   ;;  %v448_v6 = vld [vmem:[%s636_s3 + $0x8] sm:$0xff]   ;;  %v449_v7 = vld [vmem:[%s636_s3 + $0x10] sm:$0xff]   ;;  %vm342_vm2 = vcmask 60416  }
  0x14   :  { %401 = vmatprep.subr.bf16.mxu1 %v490_v0  ;;  %417 = vmatprep.mubr.msk.bf16.mxu1 %vm491_vm0, %v490_v0  ;;  %v43_v4 = vpack.c.bf16 %v42_v3, %v41_v2  ;;  %v447_v5 = vld [vmem:[%s636_s3] sm:$0xff]   ;;  %v450_v8 = vld [vmem:[%s636_s3 + $0x18] sm:$0xff]   ;;  %v452_v10 = vld [vmem:[%s636_s3 + $0x28] sm:$0xff]  }
  0x15   :  { %396 = vmatpush3.bf16.msra.mxu0 %v446_v1  ;;  %402 = vmatpush3.bf16.msra.mxu1 %v447_v5  ;;  %v451_v9 = vld [vmem:[%s636_s3 + $0x20] sm:$0xff]   ;;  %v453_v11 = vld [vmem:[%s636_s3 + $0x30] sm:$0xff]   ;;  %v454_v12 = vld [vmem:[%s636_s3 + $0x38] sm:$0xff]  }
  0x16   :  { %421 = vmatprep.subr.bf16.mxu0 %v490_v0  ;;  %403 = vmatprep.subr.bf16.mxu1 %v490_v0  ;;  %v455_v13 = vld [vmem:[%s638_s5] sm:$0xff]   ;;  %v456_v14 = vld [vmem:[%s638_s5 + $0x8] sm:$0xff]   ;;  %v457_v15 = vld [vmem:[%s638_s5 + $0x10] sm:$0xff]  }
  0x17   :  { %v458_v16 = vld [vmem:[%s638_s5 + $0x18] sm:$0xff]   ;;  %v459_v17 = vld [vmem:[%s638_s5 + $0x20] sm:$0xff]   ;;  %v460_v18 = vld [vmem:[%s638_s5 + $0x28] sm:$0xff]  }
  0x18   :  { %398 = vmatmul.mubr.msk.bf16.vlgmr.msra.gmra.mrb[0].mxu0 %vm59_vm1, %v43_v4  ;;  %v350_v19 = vld [vmem:[%s635_s2] ss:$0 sm:$0xff]  ;;  %v461_v29 = vld [vmem:[%s638_s5 + $0x30] sm:$0xff]   ;;  %v462_v30 = vld [vmem:[%s638_s5 + $0x38] sm:$0xff]  }
  0x19   :  { %437 = vmatprep.mubr.msk.bf16.mxu0 %vm491_vm0, %v490_v0  ;;  %404 = vmatpush3.bf16.msra.mxu1 %v448_v6  ;;  %v353_v31 = vld [vmem:[%s637_s4] ss:$0 sm:$0xff] }
  0x1a   :  { %405 = vmatprep.subr.bf16.mxu1 %v490_v0  ;;  %422 = vmatpush3.bf16.msra.mxu0 %v455_v13  ;;  %v362_v41 = vld [vmem:[%s639_s6] ss:$0 sm:$0xff] }
  0x1b   :  { %423 = vmatprep.subr.bf16.mxu0 %v490_v0 }
  0x1d   :  { %406 = vmatpush3.bf16.msra.mxu1 %v449_v7 }
  0x1e   :  { %407 = vmatprep.subr.bf16.mxu1 %v490_v0  ;;  %424 = vmatpush3.bf16.msra.mxu0 %v456_v14 }
  0x1f   :  { %425 = vmatprep.subr.bf16.mxu0 %v490_v0 }
  0x21   :  { %408 = vmatpush3.bf16.msra.mxu1 %v450_v8 }
  0x22   :  { %409 = vmatprep.subr.bf16.mxu1 %v490_v0  ;;  %426 = vmatpush3.bf16.msra.mxu0 %v457_v15 }
  0x23   :  { %427 = vmatprep.subr.bf16.mxu0 %v490_v0 }
  0x25   :  { %410 = vmatpush3.bf16.msra.mxu1 %v451_v9 }
  0x26   :  { %411 = vmatprep.subr.bf16.mxu1 %v490_v0  ;;  %428 = vmatpush3.bf16.msra.mxu0 %v458_v16 }
  0x27   :  { %429 = vmatprep.subr.bf16.mxu0 %v490_v0 }
  0x29   :  { %412 = vmatpush3.bf16.msra.mxu1 %v452_v10 }
  0x2a   :  { %413 = vmatprep.subr.bf16.mxu1 %v490_v0  ;;  %430 = vmatpush3.bf16.msra.mxu0 %v459_v17 }
  0x2b   :  { %431 = vmatprep.subr.bf16.mxu0 %v490_v0 }
  0x2d   :  { %414 = vmatpush3.bf16.msra.mxu1 %v453_v11 }
  0x2e   :  { %415 = vmatprep.subr.bf16.mxu1 %v490_v0  ;;  %432 = vmatpush3.bf16.msra.mxu0 %v460_v18 }
  0x2f   :  { %433 = vmatprep.subr.bf16.mxu0 %v490_v0 }
  0x31   :  { %416 = vmatpush3.bf16.msra.mxu1 %v454_v12 }
  0x32   :  { %434 = vmatpush3.bf16.msra.mxu0 %v461_v29 }
  0x33   :  { %435 = vmatprep.subr.bf16.mxu0 %v490_v0 }
  0x36   :  { %436 = vmatpush3.bf16.msra.mxu0 %v462_v30 }
  0xeb   :  { %v97_v20 = vpop.f32.mrb[0].mxu0 }
  0xec   :  { %v98_v21 = vadd.f32 %v350_v19, %v97_v20  ;;  %v399_v22 = vpop.f32.mrb[1].mxu0 }
  0xed   :  { %v100_v23 = vpop.f32.mrb[2].mxu0 }
  0xee   :  { %v101_v24 = vadd.f32 %v350_v19, %v100_v23  ;;  %v400_v25 = vpop.f32.mrb[3].mxu0  ;;  %v104_v26 = vmax.f32 %v98_v21, 0.0 }
  0xf0   :  { %v105_v27 = vmax.f32 %v101_v24, 0.0 }
  0xf2   :  { %v106_v28 = vpack.c.bf16 %v105_v27, %v104_v26 }
  0xf4   :  { %418 = vmatmul.mubr.bf16.vlgmr.msra.gmra.mrb[0].mxu1 %v106_v28 }
 0x1c7   :  { %v212_v32 = vpop.f32.mrb[0].mxu1 }
 0x1c8   :  { %v213_v33 = vadd.f32 %v353_v31, %v212_v32  ;;  %v419_v34 = vpop.f32.mrb[1].mxu1 }
 0x1c9   :  { %v215_v35 = vpop.f32.mrb[2].mxu1 }
 0x1ca   :  { %v216_v36 = vadd.f32 %v353_v31, %v215_v35  ;;  %v420_v37 = vpop.f32.mrb[3].mxu1  ;;  %v219_v38 = vmax.f32 %v213_v33, 0.0 }
 0x1cc   :  { %v220_v39 = vmax.f32 %v216_v36, 0.0 }
 0x1ce   :  { %v221_v40 = vpack.c.bf16 %v220_v39, %v219_v38 }
 0x1d0   :  { %438 = vmatmul.mubr.bf16.vlgmr.msra.gmra.mrb[4].mxu0 %v221_v40 }
 0x2a3   :  { %v327_v42 = vpop.f32.mrb[4].mxu0 }
 0x2a4   :  { %v328_v43 = vadd.f32 %v362_v41, %v327_v42  ;;  %v439_v44 = vpop.f32.mrb[5].mxu0 }
 0x2a5   :  { %v330_v45 = vpop.f32.mrb[6].mxu0 }
 0x2a6   :  { %v373_v46 = vpack.c.bf16 %v328_v43, %v328_v43  ;;  %v331_v47 = vadd.f32 %v362_v41, %v330_v45  ;;  %v440_v48 = vpop.f32.mrb[7].mxu0 }
 0x2a8   :  { %343 = vst.msk [vmem:[%s640_s7] sm:$0xf] %vm342_vm2, %v373_v46  ;;  %v374_v49 = vpack.c.bf16 %v331_v47, %v331_v47 }
 0x2aa   :  { %344 = vst.msk [vmem:[%s640_s7 + $0x4] sm:$0xf] %vm342_vm2, %v374_v49 }
 0x2ab   :  { %349 = vsyncpa [#allocation3], 1 }

</bundles_post_ra>
